<compile_context>
chip_gen: v6e
topology: v6e:2x2x1
jax: 0.10.0
libtpu: 0.0.40
codegen_flags: <defaults>
</compile_context>

<pallas_src>
import math
import numpy as np
import jax
import jax.numpy as jnp
from jax.experimental import pallas as pl
from jax.experimental.pallas import tpu as pltpu


# ----------------------------- parameter setup (glue) -----------------------------

def init_params(key, c_in, c_out):
    """nn.Conv2d(c_in, c_out, (1,1)) default init: kaiming_uniform_(a=sqrt(5)) for the
    weight and U(-1/sqrt(fan_in), 1/sqrt(fan_in)) for the bias, with fan_in = c_in."""
    kw, kb = jax.random.split(key)
    bound = 1.0 / math.sqrt(c_in)
    weight = jax.random.uniform(kw, (c_out, c_in, 1, 1), jnp.float32,
                                minval=-bound, maxval=bound)
    bias = jax.random.uniform(kb, (c_out,), jnp.float32,
                              minval=-bound, maxval=bound)
    return weight, bias


# --------------------------------- Pallas kernel ----------------------------------

def channel_embedding_kernel(x_ref, w_ref, b_ref, o_ref):
    # x_ref: [1, c_in, tile_hw], w_ref: [c_out, c_in], b_ref: [c_out, 1],
    # o_ref: [1, c_out, tile_hw].
    # One fused MXU matmul per tile, f32 accumulation, bias add on the VPU,
    # single cast at the lane-dense store.
    acc = jnp.dot(w_ref[...], x_ref[0], preferred_element_type=jnp.float32)
    o_ref[0] = (acc + b_ref[...]).astype(o_ref.dtype)


def _pick_tile_hw(hw, cap):
    """Largest multiple-of-128 divisor of hw that is <= cap; falls back to the
    full spatial extent (always a legal block shape) if none exists."""
    best = None
    t = 128
    while t <= hw:
        if hw % t == 0 and t <= cap:
            best = t
        t += 128
    return best if best is not None else hw


def channel_embedding(x, weight, bias, *, max_tile_hw=2048,
                      vmem_budget_bytes=12 * 1024 * 1024):
    """1x1 Conv2d forward, NCHW-native.
    x: [B, c_in, H, W], weight: [c_out, c_in, 1, 1], bias: [c_out] -> [B, c_out, H, W].
    Works for f32 or bf16 inputs (accumulation is always f32; output dtype follows x).
    """
    B, c_in, H, W = x.shape
    c_out = weight.shape[0]
    HW = H * W

    # Free (contiguous) views only -- no transposes, no pads, no extra HBM passes.
    x3 = x.reshape(B, c_in, HW)
    w = weight.reshape(c_out, c_in).astype(x.dtype)
    b = bias.reshape(c_out, 1).astype(jnp.float32)

    # Derive the spatial tile from a conservative VMEM budget (double-buffered input
    # + output blocks plus resident weight/bias) so it fits the default scoped VMEM
    # on every generation (v5e 16 MiB, v6e/v7x 32 MiB) without spilling.
    itemsize = jnp.dtype(x.dtype).itemsize
    fixed = 2 * (c_out * c_in * itemsize + c_out * 4)            # weight + bias bufs
    stream_per_col = 2 * (c_in + c_out) * itemsize               # x + out, 2x buffered
    cap = max(128, (vmem_budget_bytes - fixed) // stream_per_col)
    cap = min(cap, max_tile_hw)

    tile_hw = _pick_tile_hw(HW, cap)
    # Keep at least 2 grid steps so both v7x TensorCores get work when B == 1.
    if B * (HW // tile_hw) < 2 and tile_hw > 128:
        tile_hw = _pick_tile_hw(HW, max(128, tile_hw // 2))

    grid = (B, HW // tile_hw)

    cost = pl.CostEstimate(
        flops=2 * B * HW * c_in * c_out + B * HW * c_out,
        transcendentals=0,
        bytes_accessed=(x3.size + w.size) * itemsize + b.size * 4
                       + B * c_out * HW * itemsize,
    )

    out3 = pl.pallas_call(
        channel_embedding_kernel,
        out_shape=jax.ShapeDtypeStruct((B, c_out, HW), x.dtype),
        grid_spec=pltpu.PrefetchScalarGridSpec(
            num_scalar_prefetch=0,
            grid=grid,
            in_specs=[
                pl.BlockSpec((1, c_in, tile_hw), lambda bi, j: (bi, 0, j)),  # x tile
                pl.BlockSpec((c_out, c_in), lambda bi, j: (0, 0)),           # weight (resident)
                pl.BlockSpec((c_out, 1), lambda bi, j: (0, 0)),              # bias   (resident)
            ],
            out_specs=pl.BlockSpec((1, c_out, tile_hw), lambda bi, j: (bi, 0, j)),
        ),
        compiler_params=pltpu.CompilerParams(
            dimension_semantics=("parallel", "parallel"),
        ),
        cost_estimate=cost,
    )(x3, w, b)

    return out3.reshape(B, c_out, H, W)


# ------------------------------- pure-JAX reference -------------------------------

def channel_embedding_ref(x, weight, bias):
    w = weight.reshape(weight.shape[0], weight.shape[1])     # [c_out, c_in]
    y = jnp.einsum('bchw,oc->bohw', x, w)
    return y + bias[None, :, None, None]


# -------------------------------------- main ---------------------------------------

if __name__ == "__main__":
    # Small demo: c_in=4 -> c_out=128, B=2, 16x16 spatial.
    # HW = 256 -> tile_hw = 256, grid = (2, 1): two parallel steps (both TCs busy),
    # lane-dense [c_out, 256] output blocks, zero wrapper-side layout passes.
    B, c_in, H, W, c_out = 2, 4, 16, 16, 128

    key = jax.random.PRNGKey(0)
    kx, kp = jax.random.split(key)
    x = jax.random.normal(kx, (B, c_in, H, W), dtype=jnp.float32)
    weight, bias = init_params(kp, c_in, c_out)

    out = channel_embedding(x, weight, bias)
    out = jax.block_until_ready(out)

    ref = channel_embedding_ref(x, weight, bias)
    assert out.shape == (B, c_out, H, W)
    np.testing.assert_allclose(np.asarray(out), np.asarray(ref), rtol=1e-5, atol=1e-5)

    print("KERNEL_OK")
</pallas_src>

<mosaic_0001>
module attributes {stable_mosaic.version = 11 : i64} {
  func.func @channel_embedding_kernel(%arg0: i32, %arg1: i32, %arg2: memref<1x4x256xf32, #tpu.memory_space<vmem>>, %arg3: memref<128x4xf32, #tpu.memory_space<vmem>>, %arg4: memref<128x1xf32, #tpu.memory_space<vmem>>, %arg5: memref<1x128x256xf32, #tpu.memory_space<vmem>>) attributes {dimension_semantics = [#tpu.dimension_semantics<parallel>, #tpu.dimension_semantics<parallel>], iteration_bounds = array<i64: 2, 1>, scalar_prefetch = 0 : i64, scratch_operands = 0 : i64, tpu.core_type = #tpu.core_type<tc>, window_params = [{transform_indices = @transform_0, window_bounds = array<i64: 1, 4, 256>}, {pipeline_mode = #tpu.pipeline_mode<synchronous>, transform_indices = @transform_1, window_bounds = array<i64: 128, 4>}, {pipeline_mode = #tpu.pipeline_mode<synchronous>, transform_indices = @transform_2, window_bounds = array<i64: 128, 1>}, {transform_indices = @transform_3, window_bounds = array<i64: 1, 128, 256>}]} {
    %c0 = arith.constant 0 : index
    %c0_0 = arith.constant 0 : index
    %0 = vector.load %arg3[%c0, %c0_0] : memref<128x4xf32, #tpu.memory_space<vmem>>, vector<128x4xf32>
    %c0_1 = arith.constant 0 : index
    %c0_2 = arith.constant 0 : index
    %c0_3 = arith.constant 0 : index
    %1 = vector.load %arg2[%c0_1, %c0_2, %c0_3] : memref<1x4x256xf32, #tpu.memory_space<vmem>>, vector<1x4x256xf32>
    %2 = vector.shape_cast %1 : vector<1x4x256xf32> to vector<4x256xf32>
    %cst = arith.constant dense<0.000000e+00> : vector<128x256xf32>
    %3 = tpu.matmul %0, %2, %cst {dimension_numbers = #tpu.dot_dimension_numbers<[1], [0], [0], [1], [0, 0, 1, 1], [], []>} : vector<128x4xf32>, vector<4x256xf32>, vector<128x256xf32> -> vector<128x256xf32>
    %c0_4 = arith.constant 0 : index
    %c0_5 = arith.constant 0 : index
    %4 = vector.load %arg4[%c0_4, %c0_5] : memref<128x1xf32, #tpu.memory_space<vmem>>, vector<128x1xf32>
    %5 = vector.broadcast %4 : vector<128x1xf32> to vector<128x256xf32>
    %6 = arith.addf %3, %5 : vector<128x256xf32>
    %c0_6 = arith.constant 0 : index
    %c0_7 = arith.constant 0 : index
    %c0_8 = arith.constant 0 : index
    %7 = vector.load %arg5[%c0_6, %c0_7, %c0_8] : memref<1x128x256xf32, #tpu.memory_space<vmem>>, vector<1x128x256xf32>
    %8 = vector.shape_cast %7 : vector<1x128x256xf32> to vector<128x256xf32>
    %9 = vector.shape_cast %6 : vector<128x256xf32> to vector<1x128x256xf32>
    tpu.vector_store %arg5[%c0_6, %c0_7, %c0_8], %9 {strides = array<i32>} : memref<1x128x256xf32, #tpu.memory_space<vmem>>, vector<1x128x256xf32>,
    return
  }
  func.func @transform_0(%arg0: i32, %arg1: i32) -> (i32, i32, i32) {
    %c0_i32 = arith.constant 0 : i32
    %c0_i32_0 = arith.constant 0 : i32
    return %arg0, %c0_i32, %arg1 : i32, i32, i32
  }
  func.func @transform_1(%arg0: i32, %arg1: i32) -> (i32, i32) {
    %c0_i32 = arith.constant 0 : i32
    %c0_i32_0 = arith.constant 0 : i32
    %c0_i32_1 = arith.constant 0 : i32
    return %c0_i32, %c0_i32_0 : i32, i32
  }
  func.func @transform_2(%arg0: i32, %arg1: i32) -> (i32, i32) {
    %c0_i32 = arith.constant 0 : i32
    %c0_i32_0 = arith.constant 0 : i32
    %c0_i32_1 = arith.constant 0 : i32
    return %c0_i32, %c0_i32_0 : i32, i32
  }
  func.func @transform_3(%arg0: i32, %arg1: i32) -> (i32, i32, i32) {
    %c0_i32 = arith.constant 0 : i32
    %c0_i32_0 = arith.constant 0 : i32
    return %arg0, %c0_i32, %arg1 : i32, i32, i32
  }
}

</mosaic_0001>

<bundles_post_ra>
// kernel: tpu_custom_call.1
= control target key start
LH: loop header
LB: loop body
LE: loop exit
PB: predicated region body
PF: predicated region fallthrough
CT: control target
= control target key end

     0   :  { %8 = vsyncpa [#allocation3], 0  ;;  %s1154_s0 = inlined_call_operand.vmem [shape: f32[2,4,256], index: 0, kind: input, shape index: {}]   ;;  %s1155_s1 = inlined_call_operand.vmem [shape: f32[128,4], index: 1, kind: input, shape index: {}]   ;;  %s1156_s2 = inlined_call_operand.vmem [shape: f32[128,1], index: 2, kind: input, shape index: {}]   ;;  %s1157_s3 = inlined_call_operand.hbm [shape: f32[2,128,256], index: 3, kind: output, shape index: {}]  }
   0x1   :  { %10 = vsyncpa [#allocation3 + $0x1], 0  ;;  %s857_s12 = smov 0   ;;  %s859_s13 = smov 0  }
   0x2   :  { %s861_s14 = smov 0   ;;  %s863_s15 = smov 0  }
   0x3   :  { %s865_s16 = smov 0   ;;  %s867_s17 = smov 0  }
   0x4 LB: > { %s657_s18 = sadd.s32 4294967295, %s830_s17   ;;  %s658_s19 = sadd.s32 4294967294, %s830_s17   ;;  %s830_s17 = sphi %s867_s17, %s16_s17   ;;  %s826_s16 = sphi %s865_s16, %s1164_s16   ;;  %s822_s15 = sphi %s863_s15, %s1163_s15   ;;  %s818_s14 = sphi %s861_s14, %s1162_s14   ;;  %s814_s13 = sphi %s859_s13, %s1161_s13   ;;  %s810_s12 = sphi %s857_s12, %s1160_s12  }
   0x5   : > { %s28_s20 = sadd.s32 1, %s826_s16  ;;  %s107_s21 = sadd.s32 1, %s818_s14 }
   0x6   : > { %p30_p0 = scmp.ge.s32.totalorder %s28_s20, 2  ;;  %p117_p1 = scmp.ne.s32.totalorder %s818_s14, %s814_s13 }
   0x7   : > { %p118_p2 = scmp.eq.s32.totalorder %s657_s18, 1  ;;  %p123_p3 = scmp.ne.s32.totalorder %s814_s13, %s810_s12 }
   0x8   : > { %s1166_s20 = smov (%p30_p0, %s28_s20), 0  ;;  %p124_p5 = scmp.eq.s32.totalorder %s658_s19, 1 }
   0x9   : > { %p897_p4 = por %p118_p2, %p117_p1  ;;  %s102_s23 = ssub.s32 %s826_s16, %s1166_s20 }
   0xa   : > { %p661_p6 = scmp.ge.s32.totalorder %s830_s17, 1  ;;  %p105_p7 = scmp.eq.s32.totalorder %s102_s23, 0 }
   0xb   : > { %p904_p8 = por %p124_p5, %p123_p3  ;;  %p161_p9 = scmp.lt.s32.totalorder %s830_s17, 3 }
   0xc   : > { %s910_s25 = scalar_select %p105_p7, %s818_s14, %s107_s21  }
   0xd   : > { %p162_p10 = pnand %p661_p6, %p161_p9 }
   0xe   : > { %p190_p11 = scmp.lt.s32.totalorder (!%p162_p10), %s822_s15, 1  ;;  %s834_s9 = smov (!%p162_p10), [#allocation2]  }
   0xf   : > { %165 = sbr.rel (%p162_p10) target bundleno = 268 (0x10c), region = 32  ;;  %s758_s10 = sshll.u32 (!%p162_p10), %s834_s9, 4  ;;  %s759_s10 = int_to_ptr.vmem [resolvable:$false] %s758_s10 }
  0x10   : > { %s760_s11 = scalar_lea.vmem (!%p162_p10), %s759_s10, 8192 }
  0x14   : > { %v832_v0 = vmov 0.0   ;;  %s191_s26 = scalar_select %p190_p11, %s822_s15, 1  ;;  %v833_v1 = vmov 0   ;;  %v219_v2 = vld [vmem:[%s1156_s2 + $0x10] sm:$0xff]  ;;  %vm364_vm0 = vcmask 1043456   ;;  %v217_v4 = vld [vmem:[%s1156_s2] sm:$0xff] }
  0x15   : > { %433 = vmatprep.mubr.f32.mxu0 %v832_v0  ;;  %481 = vmatprep.mubr.f32.mxu1 %v832_v0  ;;  %v200_v6 = vld [vmem:[%s1155_s1] sm:$0xff]  ;;  %vm315_vm1 = vcmask 31744   ;;  %v220_v8 = vld [vmem:[%s1156_s2 + $0x18] sm:$0xff]  ;;  %v218_v9 = vld [vmem:[%s1156_s2 + $0x8] sm:$0xff] }
  0x16   : > { %752 = vset.pattern.permute.xlu1 %v833_v1  ;;  %751 = vset.pattern.permute.xlu0 %v833_v1  ;;  %s688_s27 = sshll.u32 %s191_s26, 3  ;;  %v208_v7 = vld [vmem:[%s1155_s1 + $0x40] sm:$0xff]  ;;  %v201_v10 = vld [vmem:[%s1155_s1 + $0x8] sm:$0xff]  ;;  %v202_v14 = vld [vmem:[%s1155_s1 + $0x10] sm:$0xff] }
  0x17   : > { %s197_s30 = scalar_lea.vmem %s1154_s0, %s688_s27  ;;  %245 = vperm.xlu1 %752, %v219_v2   ;;  %235 = vperm.xlu0 %751, %v217_v4   ;;  %v209_v11 = vld [vmem:[%s1155_s1 + $0x48] sm:$0xff]  ;;  %v221_v13 = vld [vmem:[%s1156_s2 + $0x20] sm:$0xff]  ;;  %v210_v15 = vld [vmem:[%s1155_s1 + $0x50] sm:$0xff]  ;;  %s186_s27 = sand.u32 1, %s814_s13  }
  0x18   : > { %v216_v3 = vld [vmem:[%s197_s30] sm:$0xff]  ;;  %v222_v12 = vld [vmem:[%s1156_s2 + $0x28] sm:$0xff]  ;;  %v224_v16 = vld [vmem:[%s1156_s2 + $0x38] sm:$0xff]  ;;  %s662_s28 = sshll.u32 %s186_s27, 8  ;;  %s689_s30 = sshll.u32 %s822_s15, 12 }
  0x19   : > { %v314_v5 = vcombine.high %v216_v3, %v216_v3  ;;  %v223_v17 = vld [vmem:[%s1156_s2 + $0x30] sm:$0xff]  ;;  %v203_v18 = vld [vmem:[%s1155_s1 + $0x18] sm:$0xff]  ;;  %v226_v20 = vld [vmem:[%s1156_s2 + $0x48] sm:$0xff]  ;;  %s1056_s29 = scalar_lea.vmem [#allocation2], %s662_s28  ;;  %s1098_s7 = scalar_lea.hbm %s1157_s3, %s689_s30 }
  0x1a   : > { %v211_v19 = vld [vmem:[%s1155_s1 + $0x58] sm:$0xff]  ;;  %v225_v21 = vld [vmem:[%s1156_s2 + $0x40] sm:$0xff]  ;;  %v227_v25 = vld [vmem:[%s1156_s2 + $0x50] sm:$0xff]  ;;  %s578_s4 = sshll.u32 %s1056_s29, 4  ;;  %s1109_s15 = scalar_lea.sflag [#allocation3], %s186_s27  ;;  %s1100_s4 = int_to_ptr.vmem [resolvable:$true] %s578_s4 }
  0x1b   : > { %665 = vmatprep.subr.msk.mxu0 %vm364_vm0, %v314_v5  ;;  %690 = vmatprep.subr.msk.mxu1 %vm364_vm0, %v314_v5  ;;  %v204_v22 = vld [vmem:[%s1155_s1 + $0x20] sm:$0xff]  ;;  %v228_v24 = vld [vmem:[%s1156_s2 + $0x58] sm:$0xff]  ;;  %v205_v26 = vld [vmem:[%s1155_s1 + $0x28] sm:$0xff]  ;;  %s754_s8 = scalar_lea.vmem %s1100_s4, 4096  ;;  %p761_p1 = scmp.lt.s32.totalorder %s1100_s4, %s759_s10 }
  0x1c   : > { %666 = vmatpush1.msk.msra.mxu0 %vm364_vm0, %v216_v3  ;;  %691 = vmatpush1.msk.msra.mxu1 %vm364_vm0, %v216_v3  ;;  %v212_v23 = vld [vmem:[%s1155_s1 + $0x60] sm:$0xff]  ;;  %v213_v27 = vld [vmem:[%s1155_s1 + $0x68] sm:$0xff]  ;;  %v206_v30 = vld [vmem:[%s1155_s1 + $0x30] sm:$0xff]  ;;  %p755_p12 = scmp.ne.s32.totalorder %s1100_s4, %s754_s8  ;;  %p762_p2 = scmp.lt.s32.totalorder %s760_s11, %s754_s8 }
  0x1d   : > { %667 = vmatmul.mubr.msk.f32.vlgmr.msra.gmra.mxu0 %vm315_vm1, %v200_v6  ;;  %675 = vmatmul.mubr.msk.f32.vlgmr.msra.gmra.mxu1 %vm315_vm1, %v208_v7  ;;  %v230_v28 = vld [vmem:[%s1156_s2 + $0x68] sm:$0xff]  ;;  %v229_v29 = vld [vmem:[%s1156_s2 + $0x60] sm:$0xff]  ;;  %v214_v31 = vld [vmem:[%s1155_s1 + $0x70] sm:$0xff] }
  0x1e   : > { %439 = vmatprep.mubr.f32.mxu0 %v832_v0  ;;  %487 = vmatprep.mubr.f32.mxu1 %v832_v0  ;;  %v232_v32 = vld [vmem:[%s1156_s2 + $0x78] sm:$0xff]  ;;  %v231_v33 = vld [vmem:[%s1156_s2 + $0x70] sm:$0xff]  ;;  %p756_p13 = pnand %p755_p12, %p897_p4  ;;  %p763_p3 = por %p762_p2, %p761_p1 }
  0x1f   : > { %250 = vperm.xlu1 %752, %v220_v8   ;;  %240 = vperm.xlu0 %751, %v218_v9   ;;  %v207_v34 = vld [vmem:[%s1155_s1 + $0x38] sm:$0xff] }
  0x20   : > { %v215_v35 = vld [vmem:[%s1155_s1 + $0x78] sm:$0xff]  ;;  %p757_p0 = pneg %p756_p13 }
  0x21   : > { %668 = vmatmul.mubr.msk.f32.gmra.mxu0 %vm315_vm1, %v201_v10  ;;  %676 = vmatmul.mubr.msk.f32.gmra.mxu1 %vm315_vm1, %v209_v11 }
  0x22   : > { %445 = vmatprep.mubr.f32.mxu0 %v832_v0  ;;  %493 = vmatprep.mubr.f32.mxu1 %v832_v0  ;;  %p764_p5 = pnand %p763_p3, %p757_p0 }
  0x23   : > { %260 = vperm.xlu1 %752, %v222_v12   ;;  %255 = vperm.xlu0 %751, %v221_v13  }
  0x25   : > { %669 = vmatmul.mubr.msk.f32.gmra.mxu0 %vm315_vm1, %v202_v14  ;;  %677 = vmatmul.mubr.msk.f32.gmra.mxu1 %vm315_vm1, %v210_v15 }
  0x26   : > { %451 = vmatprep.mubr.f32.mxu0 %v832_v0  ;;  %499 = vmatprep.mubr.f32.mxu1 %v832_v0 }
  0x27   : > { %270 = vperm.xlu1 %752, %v224_v16   ;;  %265 = vperm.xlu0 %751, %v223_v17  }
  0x29   : > { %670 = vmatmul.mubr.msk.f32.gmra.mxu0 %vm315_vm1, %v203_v18  ;;  %678 = vmatmul.mubr.msk.f32.gmra.mxu1 %vm315_vm1, %v211_v19 }
  0x2a   : > { %457 = vmatprep.mubr.f32.mxu0 %v832_v0  ;;  %505 = vmatprep.mubr.f32.mxu1 %v832_v0 }
  0x2b   : > { %280 = vperm.xlu1 %752, %v226_v20   ;;  %275 = vperm.xlu0 %751, %v225_v21  }
  0x2d   : > { %671 = vmatmul.mubr.msk.f32.gmra.mxu0 %vm315_vm1, %v204_v22  ;;  %679 = vmatmul.mubr.msk.f32.gmra.mxu1 %vm315_vm1, %v212_v23 }
  0x2e   : > { %463 = vmatprep.mubr.f32.mxu0 %v832_v0  ;;  %511 = vmatprep.mubr.f32.mxu1 %v832_v0 }
  0x2f   : > { %290 = vperm.xlu1 %752, %v228_v24   ;;  %285 = vperm.xlu0 %751, %v227_v25  }
  0x31   : > { %672 = vmatmul.mubr.msk.f32.gmra.mxu0 %vm315_vm1, %v205_v26  ;;  %680 = vmatmul.mubr.msk.f32.gmra.mxu1 %vm315_vm1, %v213_v27 }
  0x32   : > { %469 = vmatprep.mubr.f32.mxu0 %v832_v0  ;;  %517 = vmatprep.mubr.f32.mxu1 %v832_v0 }
  0x33   : > { %300 = vperm.xlu1 %752, %v230_v28   ;;  %295 = vperm.xlu0 %751, %v229_v29  }
  0x35   : > { %673 = vmatmul.mubr.msk.f32.gmra.mxu0 %vm315_vm1, %v206_v30  ;;  %681 = vmatmul.mubr.msk.f32.gmra.mxu1 %vm315_vm1, %v214_v31 }
  0x36   : > { %475 = vmatprep.mubr.f32.mxu0 %v832_v0  ;;  %523 = vmatprep.mubr.f32.mxu1 %v832_v0 }
  0x37   : > { %310 = vperm.xlu1 %752, %v232_v32   ;;  %305 = vperm.xlu0 %751, %v231_v33  }
  0x39   : > { %674 = vmatmul.mubr.msk.f32.gmra.mxu0 %vm315_vm1, %v207_v34  ;;  %682 = vmatmul.mubr.msk.f32.gmra.mxu1 %vm315_vm1, %v215_v35 }
  0x92   : > { %v236_v36 = vpop.permute.xlu0 %235  ;;  %v246_v37 = vpop.permute.xlu1 %245 }
  0x9a   : > { %v241_v38 = vpop.permute.xlu0 %240  ;;  %v251_v39 = vpop.permute.xlu1 %250 }
  0x9e   : > { %v1045_v40 = vpop.permute.xlu0 %255  ;;  %v1047_v41 = vpop.permute.xlu1 %260 }
  0xa2   : > { %v1049_v42 = vpop.permute.xlu0 %265  ;;  %v1052_v43 = vpop.permute.xlu1 %270 }
  0xa6   : > { %v276_v44 = vpop.permute.xlu0 %275  ;;  %v281_v51 = vpop.permute.xlu1 %280 }
  0xaa   : > { %v286_v60 = vpop.permute.xlu0 %285  ;;  %v291_v5 = vpop.permute.xlu1 %290 }
  0xae   : > { %v296_v14 = vpop.permute.xlu0 %295  ;;  %v301_v23 = vpop.permute.xlu1 %300 }
  0xb2   : > { %v306_v32 = vpop.permute.xlu0 %305 }
  0xdd   : > { %v435_v45 = vpop.f32.mrf.mxu0  ;;  %v483_v46 = vpop.f32.mrf.mxu1 }
  0xde   : > { %v436_v47 = vadd.f32 %v435_v45, %v236_v36  ;;  %v484_v48 = vadd.f32 %v483_v46, %v276_v44 }
  0xdf   : > { %v437_v49 = vpop.f32.mrf.mxu0  ;;  %v485_v50 = vpop.f32.mrf.mxu1 }
  0xe0   : > { %530 = vst [vmem:[%s1056_s29] sm:$0xff] %v436_v47  ;;  %546 = vst [vmem:[%s1056_s29 + $0x80] sm:$0xff] %v484_v48  ;;  %v438_v52 = vadd.f32 %v437_v49, %v236_v36  ;;  %v486_v53 = vadd.f32 %v485_v50, %v276_v44  ;;  %v311_v44 = vpop.permute.xlu1 %310 }
  0xe1   : > { %v441_v54 = vpop.f32.mrf.mxu0  ;;  %v489_v55 = vpop.f32.mrf.mxu1 }
  0xe2   : > { %531 = vst [vmem:[%s1056_s29 + $0x8] sm:$0xff] %v438_v52  ;;  %547 = vst [vmem:[%s1056_s29 + $0x88] sm:$0xff] %v486_v53  ;;  %v442_v56 = vadd.f32 %v441_v54, %v241_v38  ;;  %v490_v57 = vadd.f32 %v489_v55, %v281_v51 }
  0xe3   : > { %v443_v58 = vpop.f32.mrf.mxu0  ;;  %v491_v59 = vpop.f32.mrf.mxu1 }
  0xe4   : > { %532 = vst [vmem:[%s1056_s29 + $0x10] sm:$0xff] %v442_v56  ;;  %548 = vst [vmem:[%s1056_s29 + $0x90] sm:$0xff] %v490_v57  ;;  %v444_v61 = vadd.f32 %v443_v58, %v241_v38  ;;  %v492_v62 = vadd.f32 %v491_v59, %v281_v51 }
  0xe5   : > { %v447_v63 = vpop.f32.mrf.mxu0  ;;  %v495_v0 = vpop.f32.mrf.mxu1 }
  0xe6   : > { %533 = vst [vmem:[%s1056_s29 + $0x18] sm:$0xff] %v444_v61  ;;  %549 = vst [vmem:[%s1056_s29 + $0x98] sm:$0xff] %v492_v62  ;;  %v448_v1 = vadd.f32 %v447_v63, %v246_v37  ;;  %v496_v2 = vadd.f32 %v495_v0, %v286_v60 }
  0xe7   : > { %v449_v3 = vpop.f32.mrf.mxu0  ;;  %v497_v4 = vpop.f32.mrf.mxu1 }
  0xe8   : > { %534 = vst [vmem:[%s1056_s29 + $0x20] sm:$0xff] %v448_v1  ;;  %550 = vst [vmem:[%s1056_s29 + $0xa0] sm:$0xff] %v496_v2  ;;  %v450_v6 = vadd.f32 %v449_v3, %v246_v37  ;;  %v498_v7 = vadd.f32 %v497_v4, %v286_v60 }
  0xe9   : > { %v453_v8 = vpop.f32.mrf.mxu0  ;;  %v501_v9 = vpop.f32.mrf.mxu1 }
  0xea   : > { %535 = vst [vmem:[%s1056_s29 + $0x28] sm:$0xff] %v450_v6  ;;  %551 = vst [vmem:[%s1056_s29 + $0xa8] sm:$0xff] %v498_v7  ;;  %v454_v10 = vadd.f32 %v453_v8, %v251_v39  ;;  %v502_v11 = vadd.f32 %v501_v9, %v291_v5 }
  0xeb   : > { %v455_v12 = vpop.f32.mrf.mxu0  ;;  %v503_v13 = vpop.f32.mrf.mxu1 }
  0xec   : > { %536 = vst [vmem:[%s1056_s29 + $0x30] sm:$0xff] %v454_v10  ;;  %552 = vst [vmem:[%s1056_s29 + $0xb0] sm:$0xff] %v502_v11  ;;  %v456_v15 = vadd.f32 %v455_v12, %v251_v39  ;;  %v504_v16 = vadd.f32 %v503_v13, %v291_v5 }
  0xed   : > { %v459_v17 = vpop.f32.mrf.mxu0  ;;  %v507_v18 = vpop.f32.mrf.mxu1 }
  0xee   : > { %537 = vst [vmem:[%s1056_s29 + $0x38] sm:$0xff] %v456_v15  ;;  %553 = vst [vmem:[%s1056_s29 + $0xb8] sm:$0xff] %v504_v16  ;;  %v460_v19 = vadd.f32 %v459_v17, %v1045_v40  ;;  %v508_v20 = vadd.f32 %v507_v18, %v296_v14 }
  0xef   : > { %v461_v21 = vpop.f32.mrf.mxu0  ;;  %v509_v22 = vpop.f32.mrf.mxu1 }
  0xf0   : > { %538 = vst [vmem:[%s1056_s29 + $0x40] sm:$0xff] %v460_v19  ;;  %554 = vst [vmem:[%s1056_s29 + $0xc0] sm:$0xff] %v508_v20  ;;  %v462_v24 = vadd.f32 %v461_v21, %v1045_v40  ;;  %v510_v25 = vadd.f32 %v509_v22, %v296_v14 }
  0xf1   : > { %v465_v26 = vpop.f32.mrf.mxu0  ;;  %v513_v27 = vpop.f32.mrf.mxu1 }
  0xf2   : > { %539 = vst [vmem:[%s1056_s29 + $0x48] sm:$0xff] %v462_v24  ;;  %555 = vst [vmem:[%s1056_s29 + $0xc8] sm:$0xff] %v510_v25  ;;  %v466_v28 = vadd.f32 %v465_v26, %v1047_v41  ;;  %v514_v29 = vadd.f32 %v513_v27, %v301_v23 }
  0xf3   : > { %v467_v30 = vpop.f32.mrf.mxu0  ;;  %v515_v31 = vpop.f32.mrf.mxu1 }
  0xf4   : > { %540 = vst [vmem:[%s1056_s29 + $0x50] sm:$0xff] %v466_v28  ;;  %556 = vst [vmem:[%s1056_s29 + $0xd0] sm:$0xff] %v514_v29  ;;  %v468_v33 = vadd.f32 %v467_v30, %v1047_v41  ;;  %v516_v34 = vadd.f32 %v515_v31, %v301_v23 }
  0xf5   : > { %v471_v35 = vpop.f32.mrf.mxu0  ;;  %v519_v36 = vpop.f32.mrf.mxu1 }
  0xf6   : > { %541 = vst [vmem:[%s1056_s29 + $0x58] sm:$0xff] %v468_v33  ;;  %557 = vst [vmem:[%s1056_s29 + $0xd8] sm:$0xff] %v516_v34  ;;  %v472_v37 = vadd.f32 %v471_v35, %v1049_v42  ;;  %v520_v38 = vadd.f32 %v519_v36, %v306_v32 }
  0xf7   : > { %v473_v39 = vpop.f32.mrf.mxu0  ;;  %v521_v40 = vpop.f32.mrf.mxu1 }
  0xf8   : > { %542 = vst [vmem:[%s1056_s29 + $0x60] sm:$0xff] %v472_v37  ;;  %558 = vst [vmem:[%s1056_s29 + $0xe0] sm:$0xff] %v520_v38  ;;  %v474_v41 = vadd.f32 %v473_v39, %v1049_v42  ;;  %v522_v45 = vadd.f32 %v521_v40, %v306_v32 }
  0xf9   : > { %v477_v46 = vpop.f32.mrf.mxu0  ;;  %v525_v47 = vpop.f32.mrf.mxu1 }
  0xfa   : > { %543 = vst [vmem:[%s1056_s29 + $0x68] sm:$0xff] %v474_v41  ;;  %559 = vst [vmem:[%s1056_s29 + $0xe8] sm:$0xff] %v522_v45  ;;  %v478_v48 = vadd.f32 %v477_v46, %v1052_v43  ;;  %v526_v49 = vadd.f32 %v525_v47, %v311_v44 }
  0xfb   : > { %v479_v50 = vpop.f32.mrf.mxu0  ;;  %v527_v51 = vpop.f32.mrf.mxu1 }
  0xfc   : > { %544 = vst [vmem:[%s1056_s29 + $0x70] sm:$0xff] %v478_v48  ;;  %560 = vst [vmem:[%s1056_s29 + $0xf0] sm:$0xff] %v526_v49  ;;  %v480_v42 = vadd.f32 %v479_v50, %v1052_v43  ;;  %v528_v52 = vadd.f32 %v527_v51, %v311_v44 }
  0xfe   : > { %545 = vst [vmem:[%s1056_s29 + $0x78] sm:$0xff] %v480_v42  ;;  %561 = vst [vmem:[%s1056_s29 + $0xf8] sm:$0xff] %v528_v52 }
  0xff   : > { %767 = shalt.err (!%p764_p5)
}
 0x100   : > { %s768_s18 = scalar_lea.hbm %s1098_s7, 4096  ;;  %s772_s23 = scalar_lea.hbm %s1157_s3, 8192 }
 0x101   : > { %p769_p6 = scmp.ne.s32.totalorder %s1098_s7, %s768_s18  ;;  %p773_p10 = scmp.lt.s32.totalorder %s1098_s7, %s1157_s3 }
 0x102   : > { %p774_p11 = scmp.lt.s32.totalorder %s772_s23, %s768_s18 }
 0x103   : > { %p770_p7 = pnand %p769_p6, %p897_p4 }
 0x104   : > { %p775_p12 = por %p774_p11, %p773_p10 }
 0x105   : > { %p771_p9 = pneg %p770_p7 }
 0x107   : > { %p776_p13 = pnand %p775_p12, %p771_p9 }
 0x109   : > { %779 = shalt.err (!%p776_p13)
}
 0x10a   : > { %s835_s28 = smov 256   ;;  %s836_s29 = smov 16  }
 0x10b   : > { %692 = dma.vmem_to_hbm [thread:$0]  (%p897_p4), %s1100_s4, 4096, %s1098_s7, %s1109_s15, %s835_s28, %s835_s28, %s836_s29  }
 0x10c PF: > { %p698_p0 = scmp.ge.s32.totalorder %s830_s17, 2  ;;  %s593_s30 = sand.u32 1, %s810_s12  }
 0x10d   : > { %s594_s5 = scalar_lea.sflag [#allocation3], %s593_s30 }
 0x10e   : > { %p695_p1 = pnand %p698_p0, %p904_p8 }
 0x110   : > { %p696_p2 = pneg %p695_p1 }
 0x112   : > { %805 = dma.done.wait (%p696_p2), %s594_s5, 4096  }
 0x113   : > { %807 = vsyncadd (%p696_p2), %s594_s5, 4294963200  ;;  %s16_s17 = sadd.s32 1, %s830_s17   ;;  %s1160_s12 = smov %s814_s13 }
 0x114   : > { %p13_p3 = scmp.ge.s32.totalorder %s16_s17, 4   ;;  %s1161_s13 = smov %s818_s14 }
 0x115   : > { %s1162_s14 = smov %s910_s25  ;;  %s1163_s15 = smov %s826_s16 }
 0x116   : > { %s1164_s16 = smov %s1166_s20  ;;  %15 = sbr.rel (!%p13_p3) target bundleno = 4 (0x4), region = 67 }
 0x11b   :  { %599 = vsyncpa [#allocation3], 1 }
 0x11c   :  { %601 = vsyncpa [#allocation3 + $0x1], 1 }

</bundles_post_ra>
